<compile_context>
chip_gen: v7x
topology: tpu7x:2x2x1
jax: 0.10.0
libtpu: 0.0.40
codegen_flags: <defaults>
</compile_context>

<pallas_src>
import functools
import math

import jax
import jax.numpy as jnp
from jax import lax
from jax.experimental import pallas as pl
from jax.experimental.pallas import tpu as pltpu

_LANES = 128
_INV_SQRT2 = 1.0 / math.sqrt(2.0)
_TANH_C = math.sqrt(2.0 / math.pi)
_TANH_K = 0.044715

# ~4 MiB per block per array; with in+out double-buffered that's ~16 MiB
# resident, covered by the explicit 32 MiB vmem limit (<= physical VMEM on
# v5e/v6e's 128 MiB and v7x's 64 MiB).
_TARGET_BLOCK_BYTES = 4 * 1024 * 1024
# Never shrink blocks below this just to manufacture extra grid steps
# (measured sweeps: >=256 KiB blocks sit near the HBM roofline).
_MIN_BLOCK_BYTES = 256 * 1024
_VMEM_LIMIT_BYTES = 32 * 1024 * 1024


def _round_up(a: int, b: int) -> int:
    return ((a + b - 1) // b) * b


def _sublane_multiple(dtype) -> int:
    # Sub-32-bit dtypes pack along sublanes: min tile (8,128) f32,
    # (16,128) bf16/f16, (32,128) int8/fp8.
    bits = jnp.dtype(dtype).itemsize * 8
    if bits >= 32:
        return 8
    if bits == 16:
        return 16
    return 32


def _gelu_math(x, approximate: bool):
    if approximate:
        # tanh-approx GELU: the transcendental lands on the (otherwise idle)
        # EUP slot instead of ~25 VALU ops for the erf polynomial.
        inner = _TANH_C * (x + _TANH_K * (x * x * x))
        return 0.5 * x * (1.0 + jnp.tanh(inner))
    # exact GELU: x * 0.5 * (1 + erf(x / sqrt(2)))  (torch default)
    return x * 0.5 * (1.0 + lax.erf(x * _INV_SQRT2))


def _gelu_kernel(x_ref, o_ref, *, compute_dtype, approximate):
    # NOTE: the last grid step may be ragged; GELU of the unspecified padded
    # rows is computed and discarded on store.  Fine for an elementwise op --
    # do NOT copy this pattern into a reduction-style kernel.
    x = x_ref[...].astype(compute_dtype)
    o_ref[...] = _gelu_math(x, approximate).astype(o_ref.dtype)


def gelu_pallas(x: jax.Array, *, approximate: bool = False,
                low_precision_compute: bool = False) -> jax.Array:
    orig_shape = x.shape
    orig_dtype = x.dtype
    total = x.size
    if total == 0:
        return x

    itemsize = jnp.dtype(orig_dtype).itemsize
    is_16bit_float = jnp.issubdtype(orig_dtype, jnp.floating) and itemsize == 2
    # Default: f32 compute (matches torch's exact-erf f32 GELU on all gens).
    # Gated bf16/f16 compute halves VALU work / vreg pressure on v6e/v7x.
    compute_dtype = orig_dtype if (low_precision_compute and is_16bit_float) else jnp.float32

    flat = x.reshape(-1)
    aligned = (total // _LANES) * _LANES

    # <128-element tail handled with plain jnp (no pad/slice HBM passes).
    if aligned == 0:
        y = _gelu_math(flat.astype(compute_dtype), approximate).astype(orig_dtype)
        return y.reshape(orig_shape)

    rows = aligned // _LANES
    head = flat[:aligned].reshape(rows, _LANES)

    # ---- row-tile selection -------------------------------------------------
    sub = _sublane_multiple(orig_dtype)
    row_bytes = _LANES * itemsize
    if rows <= sub:
        tr = rows  # block == full array dims (always legal)
    else:
        block_target_rows = max(sub, (_TARGET_BLOCK_BYTES // row_bytes) // sub * sub)
        min_rows = max(sub, (_MIN_BLOCK_BYTES // row_bytes) // sub * sub)
        steps = pl.cdiv(rows, block_target_rows)      # hit ~4 MiB blocks
        if rows >= 8 * min_rows:
            steps = max(steps, 8)                      # big tensors: deep pipeline
        if rows >= 2 * min_rows:
            steps = max(steps, 2)                      # never collapse mid-size
            if steps % 2:                              # tensors to grid=(1,)
                steps += 1                             # even split for v7x's 2 TCs
        if steps <= 1:
            tr = rows                                  # single full-dims block
        else:
            tr = _round_up(pl.cdiv(rows, steps), sub)  # dtype-aware sublane multiple
    grid = (pl.cdiv(rows, tr),)

    # ---- cost estimate (advisory) -------------------------------------------
    if approximate:
        flops = 10 * aligned
        transcendentals = aligned          # one tanh (EUP) per element
    else:
        flops = 25 * aligned               # erf lowers to a VALU polynomial
        transcendentals = 0
    cost = pl.CostEstimate(
        flops=flops,
        transcendentals=transcendentals,
        bytes_accessed=2 * aligned * itemsize,   # read + write
    )

    kernel = functools.partial(_gelu_kernel, compute_dtype=compute_dtype,
                               approximate=approximate)

    head_out = pl.pallas_call(
        kernel,
        out_shape=jax.ShapeDtypeStruct((rows, _LANES), orig_dtype),
        grid_spec=pltpu.PrefetchScalarGridSpec(
            num_scalar_prefetch=0,
            grid=grid,
            in_specs=[pl.BlockSpec((tr, _LANES), lambda i: (i, 0))],
            out_specs=pl.BlockSpec((tr, _LANES), lambda i: (i, 0)),
        ),
        compiler_params=pltpu.CompilerParams(
            dimension_semantics=("parallel",),
            vmem_limit_bytes=_VMEM_LIMIT_BYTES,
        ),
        cost_estimate=cost,
    )(head)

    if aligned != total:
        tail = flat[aligned:].astype(compute_dtype)
        tail_out = _gelu_math(tail, approximate).astype(orig_dtype)
        out_flat = jnp.concatenate([head_out.reshape(-1), tail_out])
        return out_flat.reshape(orig_shape)
    return head_out.reshape(orig_shape)


def gelu_reference(x: jax.Array) -> jax.Array:
    xf = x.astype(jnp.float32)
    return (xf * 0.5 * (1.0 + lax.erf(xf * _INV_SQRT2))).astype(x.dtype)


if __name__ == "__main__":
    key = jax.random.PRNGKey(0)
    k0, k1, k2, k3 = jax.random.split(key, 4)

    # small NCHW-like activation tensor: batch=2, channels=4, spatial=16x16
    x = jax.random.normal(k0, (2, 4, 16, 16), dtype=jnp.float32)
    y = jax.block_until_ready(gelu_pallas(x))
    assert y.shape == x.shape and y.dtype == x.dtype
    assert jnp.allclose(y, gelu_reference(x), atol=1e-6, rtol=1e-6)

    # odd-sized tensor exercises the aligned-prefix + jnp-tail path
    x2 = jax.random.normal(k1, (5, 7, 9), dtype=jnp.float32)
    y2 = jax.block_until_ready(gelu_pallas(x2))
    assert y2.shape == x2.shape and y2.dtype == x2.dtype
    assert jnp.allclose(y2, gelu_reference(x2), atol=1e-6, rtol=1e-6)

    # medium f32 tensor: exercises the even >=2-step "parallel" grid
    x3 = jax.random.normal(k2, (4, 128, 256), dtype=jnp.float32)
    y3 = jax.block_until_ready(gelu_pallas(x3))
    assert jnp.allclose(y3, gelu_reference(x3), atol=1e-6, rtol=1e-6)

    # bf16 tensor: exercises dtype-aware (multiple-of-16) sublane rounding
    x4 = jax.random.normal(k3, (512, 1024), dtype=jnp.bfloat16)
    y4 = jax.block_until_ready(gelu_pallas(x4))
    assert y4.dtype == x4.dtype
    assert jnp.allclose(y4.astype(jnp.float32), gelu_reference(x4).astype(jnp.float32),
                        atol=2e-2, rtol=2e-2)

    print("KERNEL_OK")
</pallas_src>

<mosaic_0001>
module attributes {stable_mosaic.version = 11 : i64} {
  func.func @_gelu_kernel(%arg0: i32, %arg1: memref<16x128xf32, #tpu.memory_space<vmem>>, %arg2: memref<16x128xf32, #tpu.memory_space<vmem>>) attributes {dimension_semantics = [#tpu.dimension_semantics<parallel>], iteration_bounds = array<i64: 1>, scalar_prefetch = 0 : i64, scratch_operands = 0 : i64, tpu.core_type = #tpu.core_type<tc>, window_params = [{transform_indices = @transform_0, window_bounds = array<i64: 16, 128>}, {transform_indices = @transform_1, window_bounds = array<i64: 16, 128>}]} {
    %c0 = arith.constant 0 : index
    %c0_0 = arith.constant 0 : index
    %0 = vector.load %arg1[%c0, %c0_0] : memref<16x128xf32, #tpu.memory_space<vmem>>, vector<16x128xf32>
    %cst = arith.constant 5.000000e-01 : f32
    %1 = vector.broadcast %cst : f32 to vector<16x128xf32>
    %2 = arith.mulf %0, %1 : vector<16x128xf32>
    %cst_1 = arith.constant 0.707106769 : f32
    %3 = vector.broadcast %cst_1 : f32 to vector<16x128xf32>
    %4 = arith.mulf %0, %3 : vector<16x128xf32>
    %5 = math.erf %4 : vector<16x128xf32>
    %cst_2 = arith.constant 1.000000e+00 : f32
    %6 = vector.broadcast %cst_2 : f32 to vector<16x128xf32>
    %7 = arith.addf %6, %5 : vector<16x128xf32>
    %8 = arith.mulf %2, %7 : vector<16x128xf32>
    %c0_3 = arith.constant 0 : index
    %c0_4 = arith.constant 0 : index
    %9 = vector.load %arg2[%c0_3, %c0_4] : memref<16x128xf32, #tpu.memory_space<vmem>>, vector<16x128xf32>
    tpu.vector_store %arg2[%c0_3, %c0_4], %8 {strides = array<i32>} : memref<16x128xf32, #tpu.memory_space<vmem>>, vector<16x128xf32>,
    return
  }
  func.func @transform_0(%arg0: i32) -> (i32, i32) {
    %c0_i32 = arith.constant 0 : i32
    %c0_i32_0 = arith.constant 0 : i32
    return %arg0, %c0_i32 : i32, i32
  }
  func.func @transform_1(%arg0: i32) -> (i32, i32) {
    %c0_i32 = arith.constant 0 : i32
    %c0_i32_0 = arith.constant 0 : i32
    return %arg0, %c0_i32 : i32, i32
  }
}

</mosaic_0001>

<bundles_post_ra>
// kernel: tpu_custom_call.1
= control target key start
LH: loop header
LB: loop body
LE: loop exit
PB: predicated region body
PF: predicated region fallthrough
CT: control target
= control target key end

     0   :  { %6 = vsyncpa [#allocation3], 0  ;;  %s154_s0 = inlined_call_operand.hbm [shape: f32[16,128], index: 0, kind: input, shape index: {}]   ;;  %s155_s1 = inlined_call_operand.hbm [shape: f32[16,128], index: 1, kind: output, shape index: {}]  }
   0x1   :  { %7 = vsyncpa [#allocation4], 0  ;;  %s110_s6 = smov [#allocation2]   ;;  %s62_s10 = scalar_lea.hbm %s154_s0, 256 }
   0x2   :  { %s13_s7 = sshll.u32 %s110_s6, 4  ;;  %p63_p0 = scmp.ne.s32.totalorder %s154_s0, %s62_s10  ;;  %s14_s7 = int_to_ptr.vmem [resolvable:$true] %s13_s7 }
   0x3   :  { %p66_p1 = scmp.lt.u32.totalorder %s62_s10, %s154_s0 }
   0x5   :  { %p68_p2 = pnand %p66_p1, %p63_p0 }
   0x7   :  { %71 = shalt.err (!%p68_p2)
}
   0x8   :  { %s72_s15 = scalar_lea.vmem %s14_s7, 256  ;;  %p77_p4 = scmp.lt.s32.totalorder %s14_s7, %s14_s7 }
   0x9   :  { %p73_p3 = scmp.ne.s32.totalorder %s14_s7, %s72_s15  ;;  %p78_p5 = scmp.lt.s32.totalorder %s72_s15, %s72_s15 }
   0xb   :  { %p79_p6 = por %p78_p5, %p77_p4 }
   0xd   :  { %p80_p7 = pnand %p79_p6, %p73_p3 }
   0xf   :  { %83 = shalt.err (!%p80_p7)
}
  0x10   :  { %s111_s16 = smov 128   ;;  %s112_s17 = smov 8  }
  0x11   :  { %19 = dma.hbm_to_vmem [thread:$0]  %s154_s0, 256, %s14_s7, [#allocation3], %s111_s16, %s111_s16, %s112_s17  }
  0x12   :  { %106 = dma.done.wait [#allocation3], 256  }
  0x13   :  { %107 = vsyncadd [#allocation3], 4294967040  ;;  %v23_v0 = vld [vmem:[#allocation2] sm:$0xff]  ;;  %v24_v1 = vld [vmem:[#allocation2 + $0x8] sm:$0xff]  ;;  %s113_s20 = smov [#allocation5]  }
  0x14   :  { %v27_v2 = vmul.f32 0.70710677, %v23_v0  ;;  %v28_v3 = vmul.f32 0.70710677, %v24_v1  ;;  %v25_v4 = vmul.f32 0.5, %v23_v0  ;;  %v26_v6 = vmul.f32 0.5, %v24_v1 }
  0x15   :  { %s42_s21 = sshll.u32 %s113_s20, 4  ;;  %s43_s21 = int_to_ptr.vmem [resolvable:$true] %s42_s21 }
  0x16   :  { %58 = verf.f32 %v27_v2  ;;  %s84_s0 = scalar_lea.vmem %s43_s21, 256  ;;  %p89_p9 = scmp.lt.s32.totalorder %s43_s21, %s43_s21 }
  0x17   :  { %60 = verf.f32 %v28_v3  ;;  %p85_p8 = scmp.ne.s32.totalorder %s43_s21, %s84_s0  ;;  %p90_p10 = scmp.lt.s32.totalorder %s84_s0, %s84_s0 }
  0x19   :  { %p91_p11 = por %p90_p10, %p89_p9 }
  0x1b   :  { %p92_p12 = pnand %p91_p11, %p85_p8 }
  0x20   :  { %v59_v5 = vpop.eup %58 }
  0x21   :  { %v61_v7 = vpop.eup %60  ;;  %v31_v8 = vadd.f32 1.0, %v59_v5 }
  0x22   :  { %v32_v9 = vadd.f32 1.0, %v61_v7 }
  0x23   :  { %v33_v10 = vmul.f32 %v31_v8, %v25_v4 }
  0x24   :  { %v34_v11 = vmul.f32 %v32_v9, %v26_v6 }
  0x25   :  { %35 = vst [vmem:[#allocation5] sm:$0xff] %v33_v10 }
  0x26   :  { %36 = vst [vmem:[#allocation5 + $0x8] sm:$0xff] %v34_v11 }
  0x27   :  { %95 = shalt.err (!%p92_p12)
}
  0x28   :  { %s96_s24 = scalar_lea.hbm %s155_s1, 256 }
  0x29   :  { %p97_p13 = scmp.ne.s32.totalorder %s155_s1, %s96_s24  ;;  %p100_p0 = scmp.lt.u32.totalorder %s96_s24, %s155_s1 }
  0x2b   :  { %p102_p1 = pnand %p100_p0, %p97_p13 }
  0x2d   :  { %105 = shalt.err (!%p102_p1)
}
  0x2e   :  { %48 = dma.vmem_to_hbm [thread:$0]  %s43_s21, 256, %s155_s1, [#allocation4], %s111_s16, %s111_s16, %s112_s17  }
  0x2f   :  { %108 = dma.done.wait [#allocation4], 256  }
  0x30   :  { %109 = vsyncadd [#allocation4], 4294967040 }
  0x31   :  { %52 = vsyncpa [#allocation3], 1 }
  0x32   :  { %53 = vsyncpa [#allocation4], 1 }

</bundles_post_ra>
